<compile_context>
chip_gen: v5e
topology: v5e:2x2
jax: 0.10.0
libtpu: 0.0.40
codegen_flags: <defaults>
</compile_context>

<pallas_src>
import numpy as np
import jax
import jax.numpy as jnp
from jax.experimental import pallas as pl
from jax.experimental.pallas import tpu as pltpu


def self_attention_kernel(x_ref, w_ref, o_ref):
    # x block: (bb, C+1, N) f32, lane-dense N = W*H; row C of each batch is 1.0
    # w block: (2*(C+1)+pad, C+1) f32 fused weight (see _fold_weights).
    w = w_ref[...]
    caug = x_ref.shape[1]              # C + 1
    c = caug - 1
    v_off = w.shape[0] - caug          # sublane-aligned start of the value rows

    for b in range(x_ref.shape[0]):    # bb in {1, B}; tiny static unroll
        x_aug = x_ref[b]                                              # (C+1, N)

        # One fused projection matmul (contraction depth C+1 = 33):
        #   rows [0 : C+1)           -> t_aug = [(Wq^T Wk) @ x ; (bq^T Wk) @ x]
        #   rows [v_off : v_off+C+1) -> v_aug = [gamma*(Wv @ x + bv) ; ones]
        fused = jnp.dot(w, x_aug, preferred_element_type=jnp.float32)
        t_aug = fused[:caug]                                          # (C+1, N)
        v_aug = fused[v_off:v_off + caug].astype(jnp.bfloat16)        # (C+1, N)

        # energy[i, j] = x_aug[:, i] . t_aug[:, j]
        #   = x_i^T (Wq^T Wk) x_j + (bq^T Wk) x_j   (the remaining bias terms
        # are constant per row i and cancel under the softmax over j).
        # Transposed-LHS contraction: no explicit transpose, no lane-sparse
        # intermediate.
        energy = jax.lax.dot_general(
            x_aug, t_aug, (((0,), (0,)), ((), ())),
            preferred_element_type=jnp.float32)                       # (N, N)

        m = jnp.max(energy, axis=-1, keepdims=True)                   # (N, 1)
        # Unnormalized softmax numerator; bf16 cast fuses into the exp pass
        # (halves the (N,N) store + matmul read traffic).
        p = jnp.exp(energy - m).astype(jnp.bfloat16)                  # (N, N)

        # out_aug[r, i] = sum_j v_aug[r, j] * p[i, j]  (RHS-transposed MXU op,
        # no transpose of p).  The ones row of v_aug makes row C carry the
        # softmax row-sums l_i, so normalization rides the matmul for free.
        out_aug = jax.lax.dot_general(
            v_aug, p, (((1,), (1,)), ((), ())),
            preferred_element_type=jnp.float32)                       # (C+1, N)

        inv_l = pl.reciprocal(out_aug[c:caug], approx=True)           # (1, N)
        # gamma is folded into v_aug, so this is gamma*attention_out + x.
        o_ref[b] = out_aug[:c] * inv_l + x_aug[:c]                    # (C, N)


def _fold_weights(wq, bq, wk, bk, wv, bv, gamma, C):
    """Fused (2*(C+1)+pad, C+1) weight acting on x padded with a ones row.

    Row layout (all f32):
      [0 : C)            -> [Wq^T Wk      | 0]          (energy "t" rows)
      [C]                -> [bq^T Wk      | 0]          (energy bias row)
      [C+1 : C+1+pad)    -> zeros                        (sublane alignment)
      [v_off : v_off+C)  -> [gamma*Wv     | gamma*bv]   (value rows, bias folded)
      [v_off+C]          -> [0            | 1]          (ones row -> softmax sums)

    bk is intentionally unused: its contribution to the energy is constant per
    query row and cancels under the softmax.
    """
    del bk
    g = gamma.reshape(())
    caug = C + 1
    pad = (-caug) % 8
    m_qk = wq.T @ wk                                                   # (C, C)
    c_row = (bq @ wk).reshape(1, C)                                    # (1, C)
    t_blk = jnp.concatenate(
        [jnp.concatenate([m_qk, c_row], axis=0),
         jnp.zeros((caug, 1), jnp.float32)], axis=1)                   # (C+1, C+1)
    v_rows = jnp.concatenate([g * wv, (g * bv).reshape(C, 1)], axis=1) # (C, C+1)
    ones_row = jnp.concatenate(
        [jnp.zeros((1, C), jnp.float32), jnp.ones((1, 1), jnp.float32)], axis=1)
    v_blk = jnp.concatenate([v_rows, ones_row], axis=0)                # (C+1, C+1)
    pad_blk = jnp.zeros((pad, caug), jnp.float32)
    return jnp.concatenate([t_blk, pad_blk, v_blk], axis=0).astype(jnp.float32)


def _single_core_tensorcore():
    """True for 1-TensorCore chips (v5e/v6e): collapse the batch grid there.

    v7x (2 TCs/chip) and megacore parts keep grid=(B,) "parallel" so batch
    items shard one-per-core.  Unknown device kinds default to the safe
    grid=(B,) form.
    """
    try:
        kind = jax.devices()[0].device_kind.lower()
    except Exception:
        return False
    return ('v5e' in kind) or ('v6e' in kind) or ('lite' in kind)


def self_attention_pallas(x_nchw, wq, bq, wk, bk, wv, bv, gamma):
    B, C, W, H = x_nchw.shape
    N = W * H

    # NCHW -> (B, C, N) is a pure contiguous reshape; append the constant ones
    # row that folds the energy bias and the value bias into the matmuls.
    x_cn = x_nchw.reshape(B, C, N).astype(jnp.float32)
    x_aug = jnp.concatenate([x_cn, jnp.ones((B, 1, N), jnp.float32)], axis=1)

    w_fused = _fold_weights(wq, bq, wk, bk, wv, bv, gamma, C)
    rows = w_fused.shape[0]

    bb = B if _single_core_tensorcore() else 1     # batch items per grid step

    out_cn = pl.pallas_call(
        self_attention_kernel,
        out_shape=jax.ShapeDtypeStruct((B, C, N), jnp.float32),
        grid_spec=pltpu.PrefetchScalarGridSpec(
            num_scalar_prefetch=0,
            grid=(B // bb,),
            in_specs=[
                pl.BlockSpec((bb, C + 1, N), lambda b: (b, 0, 0)),  # x_aug
                pl.BlockSpec((rows, C + 1), lambda b: (0, 0)),      # fused weight
            ],
            out_specs=pl.BlockSpec((bb, C, N), lambda b: (b, 0, 0)),
        ),
        compiler_params=pltpu.CompilerParams(
            dimension_semantics=("parallel",)),
    )(x_aug, w_fused)

    # (B, C, N) -> NCHW: free reshape.
    return out_cn.reshape(B, C, W, H)


self_attention_pallas = jax.jit(self_attention_pallas)


def self_attention_ref(x, wq, bq, wk, bk, wv, bv, gamma):
    """Pure-JAX reference mirroring the PyTorch forward exactly (NCHW)."""
    B, C, W, H = x.shape
    N = W * H
    xf = x.reshape(B, C, N)
    q = jnp.einsum('oc,bcn->bon', wq, xf) + bq[None, :, None]   # (B, Cq, N)
    k = jnp.einsum('oc,bcn->bon', wk, xf) + bk[None, :, None]   # (B, Cq, N)
    v = jnp.einsum('oc,bcn->bon', wv, xf) + bv[None, :, None]   # (B, C, N)
    energy = jnp.einsum('bci,bcj->bij', q, k)                   # (B, N, N)
    attn = jax.nn.softmax(energy, axis=-1)
    out = jnp.einsum('bcj,bij->bci', v, attn)                   # (B, C, N)
    return (gamma[0] * out + xf).reshape(B, C, W, H)


if __name__ == "__main__":
    B, C, W, H = 2, 32, 16, 16        # in_dim = 32 -> query/key channels = 4
    Cq = C // 8

    key = jax.random.PRNGKey(0)
    kx, kwq, kbq, kwk, kbk, kwv, kbv = jax.random.split(key, 7)

    x = jax.random.normal(kx, (B, C, W, H), dtype=jnp.float32)
    wq = jax.random.normal(kwq, (Cq, C), dtype=jnp.float32) * 0.1
    bq = jax.random.normal(kbq, (Cq,), dtype=jnp.float32) * 0.1
    wk = jax.random.normal(kwk, (Cq, C), dtype=jnp.float32) * 0.1
    bk = jax.random.normal(kbk, (Cq,), dtype=jnp.float32) * 0.1
    wv = jax.random.normal(kwv, (C, C), dtype=jnp.float32) * 0.1
    bv = jax.random.normal(kbv, (C,), dtype=jnp.float32) * 0.1
    # PyTorch inits gamma to 0 (output == x); use a nonzero deterministic value
    # so the attention path is actually exercised.
    gamma = jnp.array([0.5], dtype=jnp.float32)

    out = self_attention_pallas(x, wq, bq, wk, bk, wv, bv, gamma)
    out = jax.block_until_ready(out)

    ref = self_attention_ref(x, wq, bq, wk, bk, wv, bv, gamma)
    # Tolerance covers the bf16 p / value operands of the output matmul, the
    # EUP approximate reciprocal, and the algebraically-equivalent (but
    # differently rounded) folded-energy / folded-normalization formulation.
    np.testing.assert_allclose(np.asarray(out), np.asarray(ref),
                               rtol=1e-2, atol=1e-2)
    print("KERNEL_OK")
</pallas_src>

<mosaic_0001>
module attributes {stable_mosaic.version = 11 : i64} {
  func.func @self_attention_kernel(%arg0: i32, %arg1: memref<1x33x256xf32, #tpu.memory_space<vmem>>, %arg2: memref<73x33xf32, #tpu.memory_space<vmem>>, %arg3: memref<1x32x256xf32, #tpu.memory_space<vmem>>) attributes {dimension_semantics = [#tpu.dimension_semantics<parallel>], iteration_bounds = array<i64: 2>, scalar_prefetch = 0 : i64, scratch_operands = 0 : i64, tpu.core_type = #tpu.core_type<tc>, window_params = [{transform_indices = @transform_0, window_bounds = array<i64: 1, 33, 256>}, {pipeline_mode = #tpu.pipeline_mode<synchronous>, transform_indices = @transform_1, window_bounds = array<i64: 73, 33>}, {transform_indices = @transform_2, window_bounds = array<i64: 1, 32, 256>}]} {
    %c0 = arith.constant 0 : index
    %c0_0 = arith.constant 0 : index
    %0 = vector.load %arg2[%c0, %c0_0] : memref<73x33xf32, #tpu.memory_space<vmem>>, vector<73x33xf32>
    %c0_1 = arith.constant 0 : index
    %c0_2 = arith.constant 0 : index
    %c0_3 = arith.constant 0 : index
    %1 = vector.load %arg1[%c0_1, %c0_2, %c0_3] : memref<1x33x256xf32, #tpu.memory_space<vmem>>, vector<1x33x256xf32>
    %2 = vector.shape_cast %1 : vector<1x33x256xf32> to vector<33x256xf32>
    %cst = arith.constant dense<0.000000e+00> : vector<73x256xf32>
    %3 = tpu.matmul %0, %2, %cst {dimension_numbers = #tpu.dot_dimension_numbers<[1], [0], [0], [1], [0, 0, 1, 1], [], []>} : vector<73x33xf32>, vector<33x256xf32>, vector<73x256xf32> -> vector<73x256xf32>
    %4 = vector.extract_strided_slice %3 {offsets = [0, 0], sizes = [33, 256], strides = [1, 1]} : vector<73x256xf32> to vector<33x256xf32>
    %5 = vector.extract_strided_slice %3 {offsets = [40, 0], sizes = [33, 256], strides = [1, 1]} : vector<73x256xf32> to vector<33x256xf32>
    %6 = arith.truncf %5 : vector<33x256xf32> to vector<33x256xbf16>
    %cst_4 = arith.constant dense<0.000000e+00> : vector<256x256xf32>
    %7 = tpu.matmul %2, %4, %cst_4 {dimension_numbers = #tpu.dot_dimension_numbers<[0], [0], [1], [1], [0, 1, 1, 1], [], []>} : vector<33x256xf32>, vector<33x256xf32>, vector<256x256xf32> -> vector<256x256xf32>
    %cst_5 = arith.constant dense<0xFF800000> : vector<256xf32>
    %8 = vector.multi_reduction <maximumf>, %7, %cst_5 [1] : vector<256x256xf32> to vector<256xf32>
    %9 = vector.shape_cast %8 : vector<256xf32> to vector<256x1xf32>
    %10 = vector.broadcast %9 : vector<256x1xf32> to vector<256x256xf32>
    %11 = arith.subf %7, %10 : vector<256x256xf32>
    %12 = math.exp %11 : vector<256x256xf32>
    %13 = arith.truncf %12 : vector<256x256xf32> to vector<256x256xbf16>
    %cst_6 = arith.constant dense<0.000000e+00> : vector<33x256xf32>
    %14 = tpu.matmul %6, %13, %cst_6 {dimension_numbers = #tpu.dot_dimension_numbers<[1], [1], [0], [0], [0, 0, 1, 0], [], []>} : vector<33x256xbf16>, vector<256x256xbf16>, vector<33x256xf32> -> vector<33x256xf32>
    %15 = vector.extract_strided_slice %14 {offsets = [32, 0], sizes = [1, 256], strides = [1, 1]} : vector<33x256xf32> to vector<1x256xf32>
    %16 = tpu.reciprocal %15 {approx = true} : vector<1x256xf32> -> vector<1x256xf32>
    %17 = vector.extract_strided_slice %14 {offsets = [0, 0], sizes = [32, 256], strides = [1, 1]} : vector<33x256xf32> to vector<32x256xf32>
    %18 = vector.broadcast %16 : vector<1x256xf32> to vector<32x256xf32>
    %19 = arith.mulf %17, %18 : vector<32x256xf32>
    %20 = vector.extract_strided_slice %2 {offsets = [0, 0], sizes = [32, 256], strides = [1, 1]} : vector<33x256xf32> to vector<32x256xf32>
    %21 = arith.addf %19, %20 : vector<32x256xf32>
    %c0_7 = arith.constant 0 : index
    %c0_8 = arith.constant 0 : index
    %c0_9 = arith.constant 0 : index
    %22 = vector.load %arg3[%c0_7, %c0_8, %c0_9] : memref<1x32x256xf32, #tpu.memory_space<vmem>>, vector<1x32x256xf32>
    %23 = vector.shape_cast %22 : vector<1x32x256xf32> to vector<32x256xf32>
    %24 = vector.shape_cast %21 : vector<32x256xf32> to vector<1x32x256xf32>
    tpu.vector_store %arg3[%c0_7, %c0_8, %c0_9], %24 {strides = array<i32>} : memref<1x32x256xf32, #tpu.memory_space<vmem>>, vector<1x32x256xf32>,
    return
  }
  func.func @transform_0(%arg0: i32) -> (i32, i32, i32) {
    %c0_i32 = arith.constant 0 : i32
    %c0_i32_0 = arith.constant 0 : i32
    %c0_i32_1 = arith.constant 0 : i32
    return %arg0, %c0_i32, %c0_i32_0 : i32, i32, i32
  }
  func.func @transform_1(%arg0: i32) -> (i32, i32) {
    %c0_i32 = arith.constant 0 : i32
    %c0_i32_0 = arith.constant 0 : i32
    %c0_i32_1 = arith.constant 0 : i32
    return %c0_i32, %c0_i32_0 : i32, i32
  }
  func.func @transform_2(%arg0: i32) -> (i32, i32, i32) {
    %c0_i32 = arith.constant 0 : i32
    %c0_i32_0 = arith.constant 0 : i32
    %c0_i32_1 = arith.constant 0 : i32
    return %arg0, %c0_i32, %c0_i32_0 : i32, i32, i32
  }
}

</mosaic_0001>

<bundles_post_ra>
// kernel: self_attention_pallas.1
= control target key start
LH: loop header
LB: loop body
LE: loop exit
PB: predicated region body
PF: predicated region fallthrough
CT: control target
= control target key end

     0   :  { %s1461_s9 = smov 0   ;;  %s2020_s0 = inlined_call_operand.vmem [shape: f32[2,33,256], index: 0, kind: input, shape index: {}]   ;;  %s2021_s1 = inlined_call_operand.vmem [shape: f32[73,33], index: 1, kind: input, shape index: {}]   ;;  %s2022_s2 = inlined_call_operand.vmem [shape: f32[2,32,256], index: 2, kind: output, shape index: {}]  }
   0x1 LB: > { %s1189_s10 = sadd.s32 4294967295, %s1444_s9   ;;  %p1193_p0 = scmp.ge.s32.totalorder %s1444_s9, 1  ;;  %s1444_s9 = sphi %s1461_s9, %s12_s9  }
   0x2   : > { %p112_p1 = scmp.lt.s32.totalorder %s1444_s9, 3 }
   0x4   : > { %p113_p2 = pnand %p1193_p0, %p112_p1 }
   0x6   : > { %116 = sbr.rel (%p113_p2) target bundleno = 946 (0x3b2), region = 28 }
   0xb   : > { %p134_p3 = scmp.lt.s32.totalorder %s1189_s10, 1  ;;  %vm195_vm0 = vcmask 1040384   ;;  %v144_v10 = vld [vmem:[%s2021_s1] sm:$0xff]  ;;  %vm164_vm1 = vcmask 269312   ;;  %v145_v11 = vld [vmem:[%s2021_s1 + $0x8] sm:$0xff]  ;;  %v146_v12 = vld [vmem:[%s2021_s1 + $0x10] sm:$0xff] }
   0xc   : > { %v147_v13 = vld [vmem:[%s2021_s1 + $0x18] sm:$0xff]  ;;  %v148_v14 = vld [vmem:[%s2021_s1 + $0x20] sm:$0xff] }
   0xd   : > { %s2083_s10 = smov (!%p134_p3, %s1189_s10), 1 }
   0xe   : > { %s1288_s11 = smul.u32 80, %s2083_s10  ;;  %s1287_s7 = sshll.u32 %s2083_s10, 6 }
   0xf   : > { %s1999_s12 = scalar_lea.vmem %s2022_s2, %s1287_s7 }
  0x10   : > { %s1475_s14 = scalar_lea.vmem %s2020_s0, %s1288_s11 }
  0x11   : > { %v162_v0 = vld [vmem:[%s1475_s14 + $0x40] sm:$0x1]  ;;  %v163_v1 = vld [vmem:[%s1475_s14 + $0x48] sm:$0x1]  ;;  %v160_v2 = vld [vmem:[%s1475_s14 + $0x30] sm:$0xff] }
  0x12   : > { %1197 = vmatpush.msk.msra.mxu0 %vm195_vm0, %v162_v0  ;;  %1208 = vmatpush.msk.msra.mxu1 %vm195_vm0, %v163_v1  ;;  %v161_v3 = vld [vmem:[%s1475_s14 + $0x38] sm:$0xff]  ;;  %v158_v4 = vld [vmem:[%s1475_s14 + $0x20] sm:$0xff]  ;;  %v159_v5 = vld [vmem:[%s1475_s14 + $0x28] sm:$0xff] }
  0x13   : > { %v154_v6 = vld [vmem:[%s1475_s14] sm:$0xff]  ;;  %v155_v7 = vld [vmem:[%s1475_s14 + $0x8] sm:$0xff]  ;;  %v156_v8 = vld [vmem:[%s1475_s14 + $0x10] sm:$0xff] }
  0x14   : > { %214 = vmatpush.msra.mxu0 %v160_v2  ;;  %261 = vmatpush.msra.mxu1 %v161_v3  ;;  %v157_v9 = vld [vmem:[%s1475_s14 + $0x18] sm:$0xff] }
  0x15   : > { %302 = vxpose.xlu0.b32.start [1/5] (short) %v154_v6, 128  ;;  %334 = vxpose.xlu1.b32.start [1/5] (short) %v155_v7, 128 }
  0x16   : > { %215 = vmatpush.msra.mxu0 %v158_v4  ;;  %262 = vmatpush.msra.mxu1 %v159_v5 }
  0x18   : > { %216 = vmatpush.msra.mxu0 %v156_v8  ;;  %263 = vmatpush.msra.mxu1 %v157_v9 }
  0x1a   : > { %217 = vmatpush.msra.mxu0 %v154_v6  ;;  %264 = vmatpush.msra.mxu1 %v155_v7 }
  0x1b   : > { %1198 = vmatmul.msk.f32.vlgmr.msra.gmra.mxu0 %vm164_vm1, %v144_v10  ;;  %1209 = vmatmul.msk.f32.vlgmr.msra.gmra.mxu1 %vm164_vm1, %v144_v10 }
  0x1d   : > { %303 = vxpose.xlu0.b32.cont [2/5] (short) %v156_v8, 128  ;;  %335 = vxpose.xlu1.b32.cont [2/5] (short) %v157_v9, 128 }
  0x23   : > { %1199 = vmatmul.msk.f32.gmra.mxu0 %vm164_vm1, %v145_v11  ;;  %1210 = vmatmul.msk.f32.gmra.mxu1 %vm164_vm1, %v145_v11 }
  0x25   : > { %304 = vxpose.xlu0.b32.cont [3/5] (short) %v158_v4, 128  ;;  %336 = vxpose.xlu1.b32.cont [3/5] (short) %v159_v5, 128 }
  0x2b   : > { %1200 = vmatmul.msk.f32.gmra.mxu0 %vm164_vm1, %v146_v12  ;;  %1211 = vmatmul.msk.f32.gmra.mxu1 %vm164_vm1, %v146_v12 }
  0x2d   : > { %305 = vxpose.xlu0.b32.cont [4/5] (short) %v160_v2, 128  ;;  %337 = vxpose.xlu1.b32.cont [4/5] (short) %v161_v3, 128 }
  0x33   : > { %1201 = vmatmul.msk.f32.gmra.mxu0 %vm164_vm1, %v147_v13  ;;  %1212 = vmatmul.msk.f32.gmra.mxu1 %vm164_vm1, %v147_v13 }
  0x35   : > { %306 = vxpose.xlu0.b32.end [5/5] (short) %v162_v0, 128  ;;  %338 = vxpose.xlu1.b32.end [5/5] (short) %v163_v1, 128 }
  0x3b   : > { %1202 = vmatmul.msk.f32.gmra.mxu0 %vm164_vm1, %v148_v14  ;;  %1213 = vmatmul.msk.f32.gmra.mxu1 %vm164_vm1, %v148_v14 }
  0x98   : > { %v219_v15 = vpop.f32.mrf.mxu0  ;;  %v266_v16 = vpop.f32.mrf.mxu1 }
  0xa0   : > { %v222_v17 = vpop.f32.mrf.mxu0  ;;  %v269_v18 = vpop.f32.mrf.mxu1 }
  0xa8   : > { %v225_v19 = vpop.f32.mrf.mxu0  ;;  %v272_v20 = vpop.f32.mrf.mxu1 }
  0xb0   : > { %v228_v21 = vpop.f32.mrf.mxu0  ;;  %v275_v22 = vpop.f32.mrf.mxu1 }
  0xb8   : > { %v231_v23 = vpop.f32.mrf.mxu0  ;;  %v278_v24 = vpop.f32.mrf.mxu1 }
  0xb9   : > { %1219 = vmatpush.msk.msra.mxu2 %vm195_vm0, %v231_v23  ;;  %1252 = vmatpush.msk.msra.mxu3 %vm195_vm0, %v278_v24  ;;  %v318_v25 = vpop.trf.xlu0  ;;  %v350_v38 = vpop.trf.xlu1 }
  0xbb   : > { %480 = vmatpush.msra.mxu2 %v228_v21  ;;  %593 = vmatpush.msra.mxu3 %v275_v22 }
  0xbd   : > { %481 = vmatpush.msra.mxu2 %v225_v19  ;;  %594 = vmatpush.msra.mxu3 %v272_v20 }
  0xbf   : > { %482 = vmatpush.msra.mxu2 %v222_v17  ;;  %595 = vmatpush.msra.mxu3 %v269_v18 }
  0xc1   : > { %596 = vmatpush.msra.mxu3 %v266_v16  ;;  %483 = vmatpush.msra.mxu2 %v219_v15  ;;  %v319_v26 = vpop.trf.xlu0  ;;  %v351_v40 = vpop.trf.xlu1 }
  0xc2   : > { %1220 = vmatmul.msk.f32.vlgmr.msra.gmra.mxu2 %vm164_vm1, %v318_v25  ;;  %1253 = vmatmul.msk.f32.vlgmr.msra.gmra.mxu3 %vm164_vm1, %v318_v25 }
  0xc9   : > { %v320_v27 = vpop.trf.xlu0  ;;  %v352_v42 = vpop.trf.xlu1 }
  0xca   : > { %1221 = vmatmul.msk.f32.gmra.mxu2 %vm164_vm1, %v319_v26  ;;  %1254 = vmatmul.msk.f32.gmra.mxu3 %vm164_vm1, %v319_v26 }
  0xd1   : > { %v321_v28 = vpop.trf.xlu0  ;;  %v353_v44 = vpop.trf.xlu1 }
  0xd2   : > { %1222 = vmatmul.msk.f32.gmra.mxu2 %vm164_vm1, %v320_v27  ;;  %1255 = vmatmul.msk.f32.gmra.mxu3 %vm164_vm1, %v320_v27 }
  0xd9   : > { %v322_v29 = vpop.trf.xlu0  ;;  %v354_v47 = vpop.trf.xlu1 }
  0xda   : > { %1223 = vmatmul.msk.f32.gmra.mxu2 %vm164_vm1, %v321_v28  ;;  %1256 = vmatmul.msk.f32.gmra.mxu3 %vm164_vm1, %v321_v28 }
  0xe1   : > { %v323_v30 = vpop.trf.xlu0  ;;  %v355_v50 = vpop.trf.xlu1 }
  0xe2   : > { %1224 = vmatmul.msk.f32.gmra.mxu2 %vm164_vm1, %v322_v29  ;;  %1257 = vmatmul.msk.f32.gmra.mxu3 %vm164_vm1, %v322_v29 }
  0xe9   : > { %v324_v31 = vpop.trf.xlu0  ;;  %v356_v53 = vpop.trf.xlu1 }
  0xea   : > { %1225 = vmatmul.msk.f32.gmra.mxu2 %vm164_vm1, %v323_v30  ;;  %1258 = vmatmul.msk.f32.gmra.mxu3 %vm164_vm1, %v323_v30 }
  0xf1   : > { %v325_v32 = vpop.trf.xlu0  ;;  %v357_v58 = vpop.trf.xlu1 }
  0xf2   : > { %1226 = vmatmul.msk.f32.gmra.mxu2 %vm164_vm1, %v324_v31  ;;  %1259 = vmatmul.msk.f32.gmra.mxu3 %vm164_vm1, %v324_v31 }
  0xf9   : > { %v326_v33 = vpop.trf.xlu0  ;;  %v358_v61 = vpop.trf.xlu1 }
  0xfa   : > { %1227 = vmatmul.msk.f32.gmra.mxu2 %vm164_vm1, %v325_v32  ;;  %1260 = vmatmul.msk.f32.gmra.mxu3 %vm164_vm1, %v325_v32 }
 0x101   : > { %v327_v34 = vpop.trf.xlu0  ;;  %v359_v0 = vpop.trf.xlu1 }
 0x102   : > { %1228 = vmatmul.msk.f32.gmra.mxu2 %vm164_vm1, %v326_v33  ;;  %1261 = vmatmul.msk.f32.gmra.mxu3 %vm164_vm1, %v326_v33 }
 0x109   : > { %v328_v35 = vpop.trf.xlu0  ;;  %v360_v3 = vpop.trf.xlu1 }
 0x10a   : > { %1229 = vmatmul.msk.f32.gmra.mxu2 %vm164_vm1, %v327_v34  ;;  %1262 = vmatmul.msk.f32.gmra.mxu3 %vm164_vm1, %v327_v34 }
 0x111   : > { %v329_v36 = vpop.trf.xlu0  ;;  %v361_v9 = vpop.trf.xlu1 }
 0x112   : > { %1230 = vmatmul.msk.f32.gmra.mxu2 %vm164_vm1, %v328_v35  ;;  %1263 = vmatmul.msk.f32.gmra.mxu3 %vm164_vm1, %v328_v35 }
 0x119   : > { %v330_v37 = vpop.trf.xlu0  ;;  %v362_v13 = vpop.trf.xlu1 }
 0x11a   : > { %1231 = vmatmul.msk.f32.gmra.mxu2 %vm164_vm1, %v329_v36  ;;  %1264 = vmatmul.msk.f32.gmra.mxu3 %vm164_vm1, %v329_v36 }
 0x121   : > { %v331_v39 = vpop.trf.xlu0  ;;  %v363_v18 = vpop.trf.xlu1 }
 0x122   : > { %1232 = vmatmul.msk.f32.gmra.mxu2 %vm164_vm1, %v330_v37  ;;  %1265 = vmatmul.msk.f32.gmra.mxu3 %vm164_vm1, %v330_v37 }
 0x129   : > { %v332_v41 = vpop.trf.xlu0  ;;  %v364_v22 = vpop.trf.xlu1 }
 0x12a   : > { %1233 = vmatmul.msk.f32.gmra.mxu2 %vm164_vm1, %v331_v39  ;;  %1266 = vmatmul.msk.f32.gmra.mxu3 %vm164_vm1, %v331_v39 }
 0x131   : > { %v333_v43 = vpop.trf.xlu0  ;;  %v365_v29 = vpop.trf.xlu1 }
 0x132   : > { %1234 = vmatmul.msk.f32.gmra.mxu2 %vm164_vm1, %v332_v41  ;;  %1267 = vmatmul.msk.f32.gmra.mxu3 %vm164_vm1, %v332_v41 }
 0x13a   : > { %1235 = vmatmul.msk.f32.gmra.mxu2 %vm164_vm1, %v333_v43  ;;  %1268 = vmatmul.msk.f32.gmra.mxu3 %vm164_vm1, %v333_v43 }
 0x142   : > { %1236 = vmatmul.msk.f32.gmra.mxu2 %vm164_vm1, %v350_v38  ;;  %1269 = vmatmul.msk.f32.gmra.mxu3 %vm164_vm1, %v350_v38 }
 0x145   : > { %v1550_v45 = vpop.f32.mrf.mxu2  ;;  %v1552_v46 = vpop.f32.mrf.mxu3 }
 0x14a   : > { %1237 = vmatmul.msk.f32.gmra.mxu2 %vm164_vm1, %v351_v40  ;;  %1270 = vmatmul.msk.f32.gmra.mxu3 %vm164_vm1, %v351_v40 }
 0x14d   : > { %v1556_v48 = vpop.f32.mrf.mxu2  ;;  %v1558_v49 = vpop.f32.mrf.mxu3 }
 0x152   : > { %1238 = vmatmul.msk.f32.gmra.mxu2 %vm164_vm1, %v352_v42  ;;  %1271 = vmatmul.msk.f32.gmra.mxu3 %vm164_vm1, %v352_v42  ;;  %v694_v42 = vmax.f32 %v1550_v45, %v1552_v46 }
 0x155   : > { %v1562_v51 = vpop.f32.mrf.mxu2  ;;  %v1564_v52 = vpop.f32.mrf.mxu3 }
 0x156   : > { %v700_v35 = vmax.f32 %v1562_v51, %v1564_v52 }
 0x15a   : > { %1239 = vmatmul.msk.f32.gmra.mxu2 %vm164_vm1, %v353_v44  ;;  %1272 = vmatmul.msk.f32.gmra.mxu3 %vm164_vm1, %v353_v44 }
 0x15d   : > { %v1568_v54 = vpop.f32.mrf.mxu2  ;;  %v1570_v55 = vpop.f32.mrf.mxu3 }
 0x15e   : > { %v703_v39 = vmax.f32 %v1568_v54, %v1570_v55 }
 0x162   : > { %1240 = vmatmul.msk.f32.gmra.mxu2 %vm164_vm1, %v354_v47  ;;  %1273 = vmatmul.msk.f32.gmra.mxu3 %vm164_vm1, %v354_v47  ;;  %v697_v47 = vmax.f32 %v1556_v48, %v1558_v49 }
 0x165   : > { %v1574_v56 = vpop.f32.mrf.mxu2  ;;  %v1576_v57 = vpop.f32.mrf.mxu3 }
 0x166   : > { %v706_v28 = vmax.f32 %v1574_v56, %v1576_v57 }
 0x16a   : > { %1241 = vmatmul.msk.f32.gmra.mxu2 %vm164_vm1, %v355_v50  ;;  %1274 = vmatmul.msk.f32.gmra.mxu3 %vm164_vm1, %v355_v50 }
 0x16d   : > { %v1580_v59 = vpop.f32.mrf.mxu2  ;;  %v1582_v60 = vpop.f32.mrf.mxu3 }
 0x16e   : > { %v709_v32 = vmax.f32 %v1580_v59, %v1582_v60 }
 0x172   : > { %1242 = vmatmul.msk.f32.gmra.mxu2 %vm164_vm1, %v356_v53  ;;  %1275 = vmatmul.msk.f32.gmra.mxu3 %vm164_vm1, %v356_v53 }
 0x175   : > { %v1586_v62 = vpop.f32.mrf.mxu2  ;;  %v1588_v63 = vpop.f32.mrf.mxu3 }
 0x176   : > { %v712_v21 = vmax.f32 %v1586_v62, %v1588_v63 }
 0x17a   : > { %1243 = vmatmul.msk.f32.gmra.mxu2 %vm164_vm1, %v357_v58  ;;  %1276 = vmatmul.msk.f32.gmra.mxu3 %vm164_vm1, %v357_v58 }
 0x17d   : > { %v1592_v1 = vpop.f32.mrf.mxu2  ;;  %v1594_v2 = vpop.f32.mrf.mxu3 }
 0x17e   : > { %v715_v25 = vmax.f32 %v1592_v1, %v1594_v2 }
 0x182   : > { %1244 = vmatmul.msk.f32.gmra.mxu2 %vm164_vm1, %v358_v61  ;;  %1277 = vmatmul.msk.f32.gmra.mxu3 %vm164_vm1, %v358_v61 }
 0x185   : > { %v1598_v4 = vpop.f32.mrf.mxu2  ;;  %v1600_v5 = vpop.f32.mrf.mxu3 }
 0x186   : > { %v718_v6 = vmax.f32 %v1598_v4, %v1600_v5 }
 0x188   : > { %719 = vmax.xlane.f32.xlu1 %v718_v6 }
 0x18a   : > { %1245 = vmatmul.msk.f32.gmra.mxu2 %vm164_vm1, %v359_v0  ;;  %1278 = vmatmul.msk.f32.gmra.mxu3 %vm164_vm1, %v359_v0 }
 0x18d   : > { %v1606_v7 = vpop.f32.mrf.mxu2  ;;  %v1608_v8 = vpop.f32.mrf.mxu3 }
 0x18e   : > { %v721_v16 = vmax.f32 %v1606_v7, %v1608_v8 }
 0x192   : > { %1246 = vmatmul.msk.f32.gmra.mxu2 %vm164_vm1, %v360_v3  ;;  %1279 = vmatmul.msk.f32.gmra.mxu3 %vm164_vm1, %v360_v3 }
 0x195   : > { %v1612_v10 = vpop.f32.mrf.mxu2  ;;  %v1614_v11 = vpop.f32.mrf.mxu3 }
 0x196   : > { %v724_v12 = vmax.f32 %v1612_v10, %v1614_v11 }
 0x198   : > { %725 = vmax.xlane.f32.xlu2 %v724_v12 }
 0x19a   : > { %1247 = vmatmul.msk.f32.gmra.mxu2 %vm164_vm1, %v361_v9  ;;  %1280 = vmatmul.msk.f32.gmra.mxu3 %vm164_vm1, %v361_v9 }
 0x19d   : > { %v1620_v14 = vpop.f32.mrf.mxu2  ;;  %v1622_v15 = vpop.f32.mrf.mxu3 }
 0x19e   : > { %v727_v17 = vmax.f32 %v1620_v14, %v1622_v15 }
 0x1a0   : > { %722 = vmax.xlane.f32.xlu2 %v721_v16  ;;  %728 = vmax.xlane.f32.xlu0 %v727_v17 }
 0x1a2   : > { %1248 = vmatmul.msk.f32.gmra.mxu2 %vm164_vm1, %v362_v13  ;;  %1281 = vmatmul.msk.f32.gmra.mxu3 %vm164_vm1, %v362_v13 }
 0x1a5   : > { %v1630_v19 = vpop.f32.mrf.mxu2  ;;  %v1632_v20 = vpop.f32.mrf.mxu3 }
 0x1a6   : > { %v730_v58 = vmax.f32 %v1630_v19, %v1632_v20 }
 0x1a8   : > { %713 = vmax.xlane.f32.xlu2 %v712_v21 }
 0x1aa   : > { %1249 = vmatmul.msk.f32.gmra.mxu2 %vm164_vm1, %v363_v18  ;;  %1282 = vmatmul.msk.f32.gmra.mxu3 %vm164_vm1, %v363_v18 }
 0x1ad   : > { %v1638_v23 = vpop.f32.mrf.mxu2  ;;  %v1640_v24 = vpop.f32.mrf.mxu3 }
 0x1ae   : > { %v733_v3 = vmax.f32 %v1638_v23, %v1640_v24 }
 0x1b0   : > { %716 = vmax.xlane.f32.xlu2 %v715_v25 }
 0x1b2   : > { %1250 = vmatmul.msk.f32.gmra.mxu2 %vm164_vm1, %v364_v22  ;;  %1283 = vmatmul.msk.f32.gmra.mxu3 %vm164_vm1, %v364_v22 }
 0x1b5   : > { %v1646_v26 = vpop.f32.mrf.mxu2  ;;  %v1648_v27 = vpop.f32.mrf.mxu3 }
 0x1b6   : > { %v736_v12 = vmax.f32 %v1646_v26, %v1648_v27 }
 0x1b8   : > { %707 = vmax.xlane.f32.xlu2 %v706_v28 }
 0x1ba   : > { %1251 = vmatmul.msk.f32.gmra.mxu2 %vm164_vm1, %v365_v29  ;;  %1284 = vmatmul.msk.f32.gmra.mxu3 %vm164_vm1, %v365_v29 }
 0x1bd   : > { %v1654_v30 = vpop.f32.mrf.mxu2  ;;  %v1656_v31 = vpop.f32.mrf.mxu3 }
 0x1be   : > { %v739_v17 = vmax.f32 %v1654_v30, %v1656_v31 }
 0x1c0   : > { %710 = vmax.xlane.f32.xlu2 %v709_v32 }
 0x1c5   : > { %v1660_v33 = vpop.f32.mrf.mxu2  ;;  %v1662_v34 = vpop.f32.mrf.mxu3 }
 0x1c6   : > { %2040 = vst [vmem:[#allocation2_spill] sm:$0xff] %v1660_v33  ;;  %v742_v36 = vmax.f32 %v1660_v33, %v1662_v34 }
 0x1c7   : > { %2041 = vst [vmem:[#allocation3_spill] sm:$0xff] %v1662_v34  ;;  %v150_v34 = vld [vmem:[%s2021_s1 + $0x30] sm:$0xff] }
 0x1c8   : > { %701 = vmax.xlane.f32.xlu2 %v700_v35  ;;  %743 = vmax.xlane.f32.xlu1 %v742_v36 }
 0x1cd   : > { %v1668_v37 = vpop.f32.mrf.mxu2  ;;  %v1670_v38 = vpop.f32.mrf.mxu3 }
 0x1d0   : > { %704 = vmax.xlane.f32.xlu2 %v703_v39 }
 0x1d5   : > { %v1674_v40 = vpop.f32.mrf.mxu2  ;;  %v1676_v41 = vpop.f32.mrf.mxu3 }
 0x1d6   : > { %2042 = vst [vmem:[#allocation4_spill] sm:$0xff] %v1674_v40 }
 0x1d7   : > { %2043 = vst [vmem:[#allocation5_spill] sm:$0xff] %v1676_v41 }
 0x1d8   : > { %695 = vmax.xlane.f32.xlu2 %v694_v42 }
 0x1dd   : > { %v1680_v43 = vpop.f32.mrf.mxu2  ;;  %v1682_v44 = vpop.f32.mrf.mxu3 }
 0x1de   : > { %2044 = vst [vmem:[#allocation6_spill] sm:$0xff] %v1682_v44 }
 0x1e0   : > { %698 = vmax.xlane.f32.xlu2 %v697_v47  ;;  %v149_v47 = vld [vmem:[%s2021_s1 + $0x28] sm:$0xff] }
 0x1e1   : > { %1203 = vmatmul.msk.f32.gmra.mxu0 %vm164_vm1, %v149_v47  ;;  %1214 = vmatmul.msk.f32.gmra.mxu1 %vm164_vm1, %v149_v47 }
 0x1e5   : > { %v1686_v50 = vpop.f32.mrf.mxu2  ;;  %v1688_v53 = vpop.f32.mrf.mxu3 }
 0x1e8   : > { %731 = vmax.xlane.f32.xlu2 %v730_v58 }
 0x1e9   : > { %1204 = vmatmul.msk.f32.gmra.mxu0 %vm164_vm1, %v150_v34  ;;  %1215 = vmatmul.msk.f32.gmra.mxu1 %vm164_vm1, %v150_v34 }
 0x1ed   : > { %v1692_v61 = vpop.f32.mrf.mxu2  ;;  %v1694_v0 = vpop.f32.mrf.mxu3 }
 0x1f0   : > { %734 = vmax.xlane.f32.xlu2 %v733_v3 }
 0x1f5   : > { %v1698_v6 = vpop.f32.mrf.mxu2  ;;  %v1700_v9 = vpop.f32.mrf.mxu3 }
 0x1f6   : > { %2045 = vst [vmem:[#allocation7_spill] sm:$0xff] %v1698_v6 }
 0x1f7   : > { %2046 = vst [vmem:[#allocation8_spill] sm:$0xff] %v1700_v9 }
 0x1f8   : > { %737 = vmax.xlane.f32.xlu2 %v736_v12 }
 0x1fd   : > { %v1704_v13 = vpop.f32.mrf.mxu2  ;;  %v1706_v16 = vpop.f32.mrf.mxu3 }
 0x200   : > { %740 = vmax.xlane.f32.xlu2 %v739_v17 }
 0x205   : > { %v1710_v18 = vpop.f32.mrf.mxu2  ;;  %v1712_v21 = vpop.f32.mrf.mxu3 }
 0x206   : > { %v766_v22 = vmax.f32 %v1710_v18, %v1712_v21 }
 0x208   : > { %767 = vmax.xlane.f32.xlu2 %v766_v22 }
 0x20b   : > { %v1716_v25 = vpop.xlane.xlu2 %725 }
 0x20d   : > { %v1718_v28 = vpop.f32.mrf.mxu2  ;;  %v1720_v29 = vpop.f32.mrf.mxu3 }
 0x20e   : > { %v769_v32 = vmax.f32 %v1718_v28, %v1720_v29 }
 0x210   : > { %770 = vmax.xlane.f32.xlu2 %v769_v32 }
 0x213   : > { %v1724_v35 = vpop.xlane.xlu2 %722 }
 0x215   : > { %v1726_v36 = vpop.f32.mrf.mxu2  ;;  %v1728_v39 = vpop.f32.mrf.mxu3 }
 0x216   : > { %2047 = vst [vmem:[#allocation9_spill] sm:$0xff] %v1726_v36  ;;  %v772_v42 = vmax.f32 %v1726_v36, %v1728_v39 }
 0x217   : > { %2048 = vst [vmem:[#allocation10_spill] sm:$0xff] %v1728_v39 }
 0x218   : > { %773 = vmax.xlane.f32.xlu2 %v772_v42 }
 0x21b   : > { %v714_v58 = vpop.xlane.xlu2 %713 }
 0x21c   : > { %v802_v17 = vsub.f32 %v1586_v62, %v714_v58  ;;  %v803_v32 = vsub.f32 %v1588_v63, %v714_v58 }
 0x21d   : > { %v1737_v3 = vpop.f32.mrf.mxu2  ;;  %v1739_v12 = vpop.f32.mrf.mxu3 }
 0x21e   : > { %2049 = vst [vmem:[#allocation11_spill] sm:$0xff] %v1737_v3  ;;  %v775_v22 = vmax.f32 %v1737_v3, %v1739_v12  ;;  %v878_v42 = vmul.f32 1.442695, %v802_v17  ;;  %v880_v33 = vmul.f32 1.442695, %v803_v32 }
 0x21f   : > { %2050 = vst [vmem:[#allocation12_spill] sm:$0xff] %v1739_v12 }
 0x220   : > { %776 = vmax.xlane.f32.xlu2 %v775_v22  ;;  %1298 = vpow2.f32 %v878_v42 }
 0x221   : > { %1300 = vpow2.f32 %v880_v33 }
 0x223   : > { %v717_v47 = vpop.xlane.xlu2 %716 }
 0x224   : > { %v804_v39 = vsub.f32 %v1592_v1, %v717_v47  ;;  %v805_v62 = vsub.f32 %v1594_v2, %v717_v47  ;;  %v151_v1 = vld [vmem:[%s2021_s1 + $0x38] sm:$0xff] }
 0x225   : > { %v1752_v36 = vpop.f32.mrf.mxu2  ;;  %v1754_v12 = vpop.f32.mrf.mxu3  ;;  %1205 = vmatmul.msk.f32.gmra.mxu0 %vm164_vm1, %v151_v1  ;;  %1216 = vmatmul.msk.f32.gmra.mxu1 %vm164_vm1, %v151_v1  ;;  %v152_v1 = vld [vmem:[%s2021_s1 + $0x40] sm:$0xff] }
 0x226   : > { %2051 = vst [vmem:[#allocation13_spill] sm:$0xff] %v1752_v36  ;;  %v882_v63 = vmul.f32 1.442695, %v804_v39  ;;  %v884_v58 = vmul.f32 1.442695, %v805_v62  ;;  %v778_v17 = vmax.f32 %v1752_v36, %v1754_v12  ;;  %v1763_v2 = vpop.eup %1298 }
 0x227   : > { %2052 = vst [vmem:[#allocation14_spill] sm:$0xff] %v1754_v12  ;;  %v1765_v39 = vpop.eup %1300 }
 0x228   : > { %1302 = vpow2.f32 %v882_v63  ;;  %779 = vmax.xlane.f32.xlu2 %v778_v17 }
 0x229   : > { %1304 = vpow2.f32 %v884_v58 }
 0x22b   : > { %v708_v34 = vpop.xlane.xlu2 %707 }
 0x22c   : > { %v798_v42 = vsub.f32 %v1574_v56, %v708_v34  ;;  %v799_v63 = vsub.f32 %v1576_v57, %v708_v34 }
 0x22d   : > { %v1767_v22 = vpop.f32.mrf.mxu2  ;;  %v1769_v32 = vpop.f32.mrf.mxu3  ;;  %1206 = vmatmul.msk.f32.gmra.mxu0 %vm164_vm1, %v152_v1  ;;  %1217 = vmatmul.msk.f32.gmra.mxu1 %vm164_vm1, %v152_v1 }
 0x22e   : > { %2053 = vst [vmem:[#allocation15_spill] sm:$0xff] %v1767_v22  ;;  %v1771_v33 = vpop.eup %1302  ;;  %v781_v47 = vmax.f32 %v1767_v22, %v1769_v32  ;;  %v870_v3 = vmul.f32 1.442695, %v798_v42  ;;  %v872_v56 = vmul.f32 1.442695, %v799_v63 }
 0x22f   : > { %2054 = vst [vmem:[#allocation16_spill] sm:$0xff] %v1769_v32  ;;  %v1776_v62 = vpop.eup %1304 }
 0x230   : > { %782 = vmax.xlane.f32.xlu2 %v781_v47  ;;  %1306 = vpow2.f32 %v870_v3 }
 0x231   : > { %1308 = vpow2.f32 %v872_v56 }
 0x233   : > { %v711_v12 = vpop.xlane.xlu2 %710 }
 0x234   : > { %v800_v57 = vsub.f32 %v1580_v59, %v711_v12  ;;  %v801_v34 = vsub.f32 %v1582_v60, %v711_v12 }
 0x235   : > { %v1790_v58 = vpop.f32.mrf.mxu2  ;;  %v1792_v47 = vpop.f32.mrf.mxu3 }
 0x236   : > { %v874_v17 = vmul.f32 1.442695, %v800_v57  ;;  %v876_v36 = vmul.f32 1.442695, %v801_v34  ;;  %v784_v42 = vmax.f32 %v1790_v58, %v1792_v47  ;;  %v1796_v1 = vpop.eup %1306  ;;  %v760_v34 = vmax.f32 %v1698_v6, %v1700_v9 }
 0x237   : > { %v1798_v59 = vpop.eup %1308 }
 0x238   : > { %1310 = vpow2.f32 %v874_v17  ;;  %785 = vmax.xlane.f32.xlu2 %v784_v42  ;;  %v153_v42 = vld [vmem:[%s2021_s1 + $0x48] sm:$0x1] }
 0x239   : > { %1312 = vpow2.f32 %v876_v36  ;;  %1207 = vmatmul.msk.f32.gmra.mxu0 %vm164_vm1, %v153_v42  ;;  %1218 = vmatmul.msk.f32.gmra.mxu1 %vm164_vm1, %v153_v42 }
 0x23b   : > { %v702_v63 = vpop.xlane.xlu2 %701 }
 0x23c   : > { %v794_v3 = vsub.f32 %v1562_v51, %v702_v63  ;;  %v795_v36 = vsub.f32 %v1564_v52, %v702_v63 }
 0x23d   : > { %v1800_v60 = vpop.f32.mrf.mxu2  ;;  %v1802_v12 = vpop.f32.mrf.mxu3 }
 0x23e   : > { %2055 = vst [vmem:[#allocation17_spill] sm:$0xff] %v1800_v60  ;;  %v1804_v32 = vpop.eup %1310  ;;  %v787_v57 = vmax.f32 %v1800_v60, %v1802_v12  ;;  %v862_v22 = vmul.f32 1.442695, %v794_v3  ;;  %v864_v51 = vmul.f32 1.442695, %v795_v36 }
 0x23f   : > { %2056 = vst [vmem:[#allocation18_spill] sm:$0xff] %v1802_v12  ;;  %v1809_v56 = vpop.eup %1312 }
 0x240   : > { %788 = vmax.xlane.f32.xlu2 %v787_v57  ;;  %1314 = vpow2.f32 %v862_v22 }
 0x241   : > { %1316 = vpow2.f32 %v864_v51 }
 0x243   : > { %v705_v12 = vpop.xlane.xlu2 %704 }
 0x244   : > { %v796_v52 = vsub.f32 %v1568_v54, %v705_v12  ;;  %v797_v63 = vsub.f32 %v1570_v55, %v705_v12  ;;  %v763_v55 = vmax.f32 %v1704_v13, %v1706_v16 }
 0x246   : > { %v866_v57 = vmul.f32 1.442695, %v796_v52  ;;  %v868_v17 = vmul.f32 1.442695, %v797_v63  ;;  %v1825_v60 = vpop.eup %1314 }
 0x247   : > { %v1827_v42 = vpop.eup %1316 }
 0x248   : > { %1318 = vpow2.f32 %v866_v57  ;;  %761 = vmax.xlane.f32.xlu2 %v760_v34 }
 0x249   : > { %1320 = vpow2.f32 %v868_v17 }
 0x24b   : > { %v696_v3 = vpop.xlane.xlu2 %695 }
 0x24c   : > { %v790_v54 = vsub.f32 %v1550_v45, %v696_v3  ;;  %v791_v12 = vsub.f32 %v1552_v46, %v696_v3  ;;  %v754_v46 = vmax.f32 %v1686_v50, %v1688_v53 }
 0x24e   : > { %v1829_v36 = vpop.eup %1318  ;;  %v854_v51 = vmul.f32 1.442695, %v790_v54  ;;  %v856_v52 = vmul.f32 1.442695, %v791_v12 }
 0x24f   : > { %v1834_v22 = vpop.eup %1320 }
 0x250   : > { %764 = vmax.xlane.f32.xlu2 %v763_v55  ;;  %1322 = vpow2.f32 %v854_v51 }
 0x251   : > { %1324 = vpow2.f32 %v856_v52  ;;  %v748_v52 = vmax.f32 %v1674_v40, %v1676_v41  ;;  %v745_v41 = vmax.f32 %v1668_v37, %v1670_v38 }
 0x253   : > { %v699_v63 = vpop.xlane.xlu2 %698 }
 0x254   : > { %v792_v57 = vsub.f32 %v1556_v48, %v699_v63  ;;  %v793_v45 = vsub.f32 %v1558_v49, %v699_v63  ;;  %v757_v48 = vmax.f32 %v1692_v61, %v1694_v0 }
 0x256   : > { %v858_v9 = vmul.f32 1.442695, %v792_v57  ;;  %v860_v6 = vmul.f32 1.442695, %v793_v45  ;;  %v1845_v55 = vpop.eup %1322  ;;  %v751_v45 = vmax.f32 %v1680_v43, %v1682_v44 }
 0x257   : > { %v1847_v54 = vpop.eup %1324 }
 0x258   : > { %1326 = vpow2.f32 %v858_v9  ;;  %755 = vmax.xlane.f32.xlu2 %v754_v46 }
 0x259   : > { %1328 = vpow2.f32 %v860_v6 }
 0x25b   : > { %v732_v3 = vpop.xlane.xlu2 %731 }
 0x25e   : > { %v1849_v12 = vpop.eup %1326 }
 0x25f   : > { %v1853_v49 = vpop.eup %1328 }
 0x260   : > { %758 = vmax.xlane.f32.xlu2 %v757_v48 }
 0x263   : > { %v735_v6 = vpop.xlane.xlu2 %734 }
 0x264   : > { %v817_v44 = vsub.f32 %v1640_v24, %v735_v6 }
 0x268   : > { %749 = vmax.xlane.f32.xlu2 %v748_v52  ;;  %v816_v52 = vsub.f32 %v1638_v23, %v735_v6  ;;  %v811_v23 = vsub.f32 %v1614_v11, %v1716_v25 }
 0x26b   : > { %v738_v63 = vpop.xlane.xlu2 %737 }
 0x26c   : > { %v818_v57 = vsub.f32 %v1646_v26, %v738_v63  ;;  %v819_v46 = vsub.f32 %v1648_v27, %v738_v63  ;;  %v814_v27 = vsub.f32 %v1630_v19, %v732_v3  ;;  %v729_v63 = vpop.xlane.xlu0 %728 }
 0x26d   : > { %v812_v24 = vsub.f32 %v1620_v14, %v729_v63 }
 0x26e   : > { %v910_v17 = vmul.f32 1.442695, %v818_v57  ;;  %v912_v51 = vmul.f32 1.442695, %v819_v46  ;;  %v906_v57 = vmul.f32 1.442695, %v816_v52 }
 0x270   : > { %752 = vmax.xlane.f32.xlu2 %v751_v45  ;;  %1330 = vpow2.f32 %v910_v17 }
 0x271   : > { %1332 = vpow2.f32 %v912_v51  ;;  %v902_v51 = vmul.f32 1.442695, %v814_v27 }
 0x273   : > { %v741_v48 = vpop.xlane.xlu2 %740 }
 0x274   : > { %v820_v34 = vsub.f32 %v1654_v30, %v741_v48  ;;  %v821_v9 = vsub.f32 %v1656_v31, %v741_v48  ;;  %v815_v30 = vsub.f32 %v1632_v20, %v732_v3  ;;  %v810_v31 = vsub.f32 %v1612_v10, %v1716_v25 }
 0x275   : > { %v896_v3 = vmul.f32 1.442695, %v811_v23  ;;  %v898_v25 = vmul.f32 1.442695, %v812_v24 }
 0x276   : > { %v914_v26 = vmul.f32 1.442695, %v820_v34  ;;  %v916_v40 = vmul.f32 1.442695, %v821_v9  ;;  %v908_v34 = vmul.f32 1.442695, %v817_v44  ;;  %v1331_v9 = vpop.eup %1330 }
 0x277   : > { %v1333_v19 = vpop.eup %1332  ;;  %v904_v6 = vmul.f32 1.442695, %v815_v30  ;;  %v894_v20 = vmul.f32 1.442695, %v810_v31  ;;  %v808_v31 = vsub.f32 %v1606_v7, %v1724_v35 }
 0x278   : > { %1334 = vpow2.f32 %v914_v26  ;;  %746 = vmax.xlane.f32.xlu2 %v745_v41  ;;  %v813_v41 = vsub.f32 %v1622_v15, %v729_v63  ;;  %v720_v63 = vpop.xlane.xlu1 %719 }
 0x279   : > { %1336 = vpow2.f32 %v916_v40 }
 0x27a   : > { %1338 = vpow2.f32 %v906_v57  ;;  %v900_v14 = vmul.f32 1.442695, %v813_v41  ;;  %v890_v41 = vmul.f32 1.442695, %v808_v31  ;;  %v2059_v31 = vpack.c.bf16 %v1804_v32, %v1796_v1 }
 0x27b   : > { %v768_v17 = vpop.xlane.xlu2 %767  ;;  %1340 = vpow2.f32 %v908_v34  ;;  %v2062_v32 = vpack.c.bf16 %v1834_v22, %v1827_v42  ;;  %v2068_v42 = vld [vmem:[#allocation14_spill] sm:$0xff] }
 0x27c   : > { %v838_v40 = vsub.f32 %v1710_v18, %v768_v17  ;;  %v839_v11 = vsub.f32 %v1712_v21, %v768_v17  ;;  %1342 = vpow2.f32 %v902_v51  ;;  %v809_v17 = vsub.f32 %v1608_v8, %v1724_v35 }
 0x27d   : > { %1344 = vpow2.f32 %v904_v6 }
 0x27e   : > { %v1335_v45 = vpop.eup %1334  ;;  %1346 = vpow2.f32 %v894_v20  ;;  %v950_v15 = vmul.f32 1.442695, %v838_v40  ;;  %v952_v48 = vmul.f32 1.442695, %v839_v11 }
 0x27f   : > { %v1337_v10 = vpop.eup %1336  ;;  %v996_v44 = vpack.c.bf16 %v1335_v45, %v1331_v9  ;;  %1348 = vpow2.f32 %v896_v3  ;;  %v892_v45 = vmul.f32 1.442695, %v809_v17  ;;  %v281_v17 = vpop.f32.mrf.mxu1 }
 0x280   : > { %v997_v46 = vpack.c.bf16 %v1337_v10, %v1333_v19  ;;  %v1339_v26 = vpop.eup %1338  ;;  %1350 = vpow2.f32 %v898_v25  ;;  %v807_v19 = vsub.f32 %v1600_v5, %v720_v63 }
 0x281   : > { %1014 = vmatpush.bf16.xpose.msrb.mxu0 %v996_v44  ;;  %v1341_v21 = vpop.eup %1340  ;;  %1352 = vpow2.f32 %v900_v14 }
 0x282   : > { %1037 = vmatpush.bf16.xpose.msrb.mxu1 %v997_v46  ;;  %v1343_v30 = vpop.eup %1342  ;;  %1354 = vpow2.f32 %v950_v15 }
 0x283   : > { %v771_v52 = vpop.xlane.xlu2 %770  ;;  %v1345_v34 = vpop.eup %1344  ;;  %1356 = vpow2.f32 %v952_v48  ;;  %v994_v9 = vpack.c.bf16 %v1339_v26, %v1343_v30 }
 0x284   : > { %v840_v18 = vsub.f32 %v1718_v28, %v771_v52  ;;  %v841_v27 = vsub.f32 %v1720_v29, %v771_v52  ;;  %v1347_v24 = vpop.eup %1346  ;;  %v806_v28 = vsub.f32 %v1598_v4, %v720_v63  ;;  %v995_v29 = vpack.c.bf16 %v1341_v21, %v1345_v34  ;;  %v234_v34 = vpop.f32.mrf.mxu0 }
 0x285   : > { %v1349_v51 = vpop.eup %1348  ;;  %v888_v4 = vmul.f32 1.442695, %v807_v19  ;;  %v2057_v21 = vpack.c.bf16 %v1771_v33, %v1763_v2  ;;  %v2058_v63 = vpack.c.bf16 %v1776_v62, %v1765_v39  ;;  %v2061_v39 = vpack.c.bf16 %v1829_v36, %v1825_v60  ;;  %v2066_v60 = vld [vmem:[#allocation16_spill] sm:$0xff] }
 0x286   : > { %v954_v57 = vmul.f32 1.442695, %v840_v18  ;;  %v956_v23 = vmul.f32 1.442695, %v841_v27  ;;  %v1351_v7 = vpop.eup %1350  ;;  %v886_v35 = vmul.f32 1.442695, %v806_v28 }
 0x287   : > { %v1353_v6 = vpop.eup %1352  ;;  %v992_v5 = vpack.c.bf16 %v1351_v7, %v1347_v24  ;;  %v2064_v24 = vld [vmem:[#allocation18_spill] sm:$0xff]  ;;  %v284_v7 = vpop.f32.mrf.mxu1 }
 0x288   : > { %1358 = vpow2.f32 %v954_v57  ;;  %v1891_v8 = vpop.eup %1354  ;;  %v993_v44 = vpack.c.bf16 %v1353_v6, %v1349_v51  ;;  %v2060_v57 = vpack.c.bf16 %v1809_v56, %v1798_v59  ;;  %v2063_v59 = vld [vmem:[#allocation17_spill] sm:$0xff]  ;;  %v2065_v51 = vld [vmem:[#allocation15_spill] sm:$0xff] }
 0x289   : > { %1360 = vpow2.f32 %v956_v23  ;;  %1015 = vmatpush.bf16.xpose.msrb.mxu0 %v994_v9  ;;  %v1893_v40 = vpop.eup %1356 }
 0x28a   : > { %1038 = vmatpush.bf16.xpose.msrb.mxu1 %v995_v29  ;;  %1362 = vpow2.f32 %v890_v41  ;;  %v2067_v41 = vld [vmem:[#allocation13_spill] sm:$0xff] }
 0x28b   : > { %v1889_v20 = vpop.xlane.xlu2 %773  ;;  %1364 = vpow2.f32 %v892_v45  ;;  %v2069_v45 = vpack.c.bf16 %v1849_v12, %v1845_v55  ;;  %v2071_v55 = vld [vmem:[#allocation11_spill] sm:$0xff] }
 0x28c   : > { %1366 = vpow2.f32 %v886_v35  ;;  %v237_v29 = vpop.f32.mrf.mxu0 }
 0x28d   : > { %1368 = vpow2.f32 %v888_v4  ;;  %v2070_v4 = vpack.c.bf16 %v1853_v49, %v1847_v54  ;;  %v2072_v54 = vld [vmem:[#allocation12_spill] sm:$0xff] }
 0x28e   : > { %v1895_v10 = vpop.eup %1358 }
 0x28f   : > { %v1897_v3 = vpop.eup %1360  ;;  %v1006_v11 = vpack.c.bf16 %v1895_v10, %v1891_v8  ;;  %v2077_v8 = vld [vmem:[#allocation4_spill] sm:$0xff] }
 0x290   : > { %v1007_v25 = vpack.c.bf16 %v1897_v3, %v1893_v40  ;;  %v1363_v14 = vpop.eup %1362 }
 0x291   : > { %1016 = vmatpush.bf16.xpose.msrb.mxu0 %v992_v5  ;;  %v1365_v15 = vpop.eup %1364 }
 0x292   : > { %1039 = vmatpush.bf16.xpose.msrb.mxu1 %v993_v44  ;;  %v1367_v48 = vpop.eup %1366 }
 0x293   : > { %v1903_v46 = vpop.xlane.xlu2 %776  ;;  %v1369_v52 = vpop.eup %1368  ;;  %v990_v26 = vpack.c.bf16 %v1363_v14, %v1367_v48  ;;  %v1939_v48 = vpack.c.bf16 %v237_v29, %v234_v34 }
 0x294   : > { %v991_v18 = vpack.c.bf16 %v1365_v15, %v1369_v52  ;;  %v844_v12 = vsub.f32 %v2071_v55, %v1903_v46  ;;  %v845_v49 = vsub.f32 %v2072_v54, %v1903_v46 }
 0x296   : > { %v964_v46 = vmul.f32 1.442695, %v845_v49 }
 0x299   : > { %1017 = vmatpush.bf16.xpose.msrb.mxu0 %v990_v26 }
 0x29a   : > { %1040 = vmatpush.bf16.xpose.msrb.mxu1 %v991_v18  ;;  %v1941_v18 = vpack.c.bf16 %v284_v7, %v281_v17  ;;  %v2074_v17 = vld [vmem:[#allocation10_spill] sm:$0xff] }
 0x29b   : > { %v780_v27 = vpop.xlane.xlu2 %779 }
 0x29c   : > { %v846_v6 = vsub.f32 %v2067_v41, %v780_v27  ;;  %v847_v22 = vsub.f32 %v2068_v42, %v780_v27 }
 0x29e   : > { %v966_v15 = vmul.f32 1.442695, %v846_v6  ;;  %v968_v26 = vmul.f32 1.442695, %v847_v22  ;;  %v2075_v22 = vld [vmem:[#allocation7_spill] sm:$0xff] }
 0x2a1   : > { %1018 = vmatpush.bf16.xpose.msrb.mxu0 %v2057_v21 }
 0x2a2   : > { %1041 = vmatpush.bf16.xpose.msrb.mxu1 %v2058_v63  ;;  %v287_v34 = vpop.f32.mrf.mxu1 }
 0x2a3   : > { %v783_v30 = vpop.xlane.xlu2 %782 }
 0x2a4   : > { %v849_v36 = vsub.f32 %v2066_v60, %v783_v30 }
 0x2a6   : > { %v972_v5 = vmul.f32 1.442695, %v849_v36 }
 0x2a9   : > { %1019 = vmatpush.bf16.xpose.msrb.mxu0 %v2059_v31  ;;  %v2073_v31 = vld [vmem:[#allocation9_spill] sm:$0xff] }
 0x2aa   : > { %1042 = vmatpush.bf16.xpose.msrb.mxu1 %v2060_v57  ;;  %v842_v57 = vsub.f32 %v2073_v31, %v1889_v20  ;;  %v290_v29 = vpop.f32.mrf.mxu1 }
 0x2ab   : > { %v786_v23 = vpop.xlane.xlu2 %785  ;;  %v1955_v7 = vpack.c.bf16 %v290_v29, %v287_v34  ;;  %v2081_v29 = vld [vmem:[#allocation3_spill] sm:$0xff] }
 0x2ac   : > { %v850_v9 = vsub.f32 %v1790_v58, %v786_v23  ;;  %v851_v2 = vsub.f32 %v1792_v47, %v786_v23  ;;  %v848_v58 = vsub.f32 %v2065_v51, %v783_v30  ;;  %v240_v30 = vpop.f32.mrf.mxu0 }
 0x2ae   : > { %v974_v33 = vmul.f32 1.442695, %v850_v9  ;;  %v976_v62 = vmul.f32 1.442695, %v851_v2  ;;  %v970_v35 = vmul.f32 1.442695, %v848_v58  ;;  %v843_v9 = vsub.f32 %v2074_v17, %v1889_v20  ;;  %v744_v17 = vpop.xlane.xlu1 %743 }
 0x2af   : > { %v962_v2 = vmul.f32 1.442695, %v844_v12 }
 0x2b0   : > { %1370 = vpow2.f32 %v974_v33 }
 0x2b1   : > { %1020 = vmatpush.bf16.xpose.msrb.mxu0 %v2061_v39  ;;  %1372 = vpow2.f32 %v976_v62 }
 0x2b2   : > { %1043 = vmatpush.bf16.xpose.msrb.mxu1 %v2062_v32  ;;  %v958_v32 = vmul.f32 1.442695, %v842_v57 }
 0x2b3   : > { %v789_v1 = vpop.xlane.xlu2 %788 }
 0x2b4   : > { %v852_v56 = vsub.f32 %v2063_v59, %v789_v1  ;;  %v853_v28 = vsub.f32 %v2064_v24, %v789_v1  ;;  %v960_v1 = vmul.f32 1.442695, %v843_v9  ;;  %v243_v20 = vpop.f32.mrf.mxu0 }
 0x2b6   : > { %v978_v47 = vmul.f32 1.442695, %v852_v56  ;;  %v980_v19 = vmul.f32 1.442695, %v853_v28  ;;  %v1371_v14 = vpop.eup %1370 }
 0x2b7   : > { %v1373_v52 = vpop.eup %1372 }
 0x2b8   : > { %1374 = vpow2.f32 %v978_v47  ;;  %v1953_v47 = vpack.c.bf16 %v243_v20, %v240_v30 }
 0x2b9   : > { %1376 = vpow2.f32 %v980_v19  ;;  %1021 = vmatpush.bf16.xpose.msrb.mxu0 %v2069_v45 }
 0x2ba   : > { %1044 = vmatpush.bf16.xpose.msrb.mxu1 %v2070_v4  ;;  %1378 = vpow2.f32 %v970_v35  ;;  %v2076_v4 = vld [vmem:[#allocation8_spill] sm:$0xff] }
 0x2bb   : > { %v1937_v44 = vpop.xlane.xlu2 %761  ;;  %1380 = vpow2.f32 %v972_v5 }
 0x2bc   : > { %1382 = vpow2.f32 %v966_v15  ;;  %v834_v45 = vsub.f32 %v2075_v22, %v1937_v44  ;;  %v835_v5 = vsub.f32 %v2076_v4, %v1937_v44  ;;  %v246_v12 = vpop.f32.mrf.mxu0 }
 0x2bd   : > { %1384 = vpow2.f32 %v968_v26  ;;  %v1975_v30 = vpack.c.bf16 %v246_v12, %v246_v12 }
 0x2be   : > { %v1375_v27 = vpop.eup %1374  ;;  %1386 = vpow2.f32 %v962_v2  ;;  %v944_v26 = vmul.f32 1.442695, %v835_v5 }
 0x2bf   : > { %v1377_v21 = vpop.eup %1376  ;;  %v1012_v63 = vpack.c.bf16 %v1375_v27, %v1371_v14  ;;  %1388 = vpow2.f32 %v964_v46 }
 0x2c0   : > { %1022 = vmatmul.bf16.vlgmr.msrb.gmra.mxu0 %v1939_v48  ;;  %v1013_v23 = vpack.c.bf16 %v1377_v21, %v1373_v52  ;;  %v1379_v33 = vpop.eup %1378  ;;  %1390 = vpow2.f32 %v958_v32  ;;  %v942_v52 = vmul.f32 1.442695, %v834_v45 }
 0x2c1   : > { %1045 = vmatmul.bf16.vlgmr.msrb.gmra.mxu1 %v1941_v18  ;;  %1060 = vmatpush.bf16.xpose.msra.mxu0 %v1012_v63  ;;  %v1381_v62 = vpop.eup %1380  ;;  %1392 = vpow2.f32 %v960_v1 }
 0x2c2   : > { %1083 = vmatpush.bf16.xpose.msra.mxu1 %v1013_v23  ;;  %v1383_v59 = vpop.eup %1382  ;;  %v2078_v23 = vld [vmem:[#allocation5_spill] sm:$0xff] }
 0x2c3   : > { %v765_v39 = vpop.xlane.xlu2 %764  ;;  %v1385_v56 = vpop.eup %1384  ;;  %v1010_v24 = vpack.c.bf16 %v1379_v33, %v1383_v59  ;;  %v2079_v33 = vld [vmem:[#allocation6_spill] sm:$0xff] }
 0x2c4   : > { %v1011_v28 = vpack.c.bf16 %v1381_v62, %v1385_v56  ;;  %v1387_v58 = vpop.eup %1386  ;;  %v836_v36 = vsub.f32 %v1704_v13, %v765_v39  ;;  %v837_v6 = vsub.f32 %v1706_v16, %v765_v39  ;;  %v2080_v59 = vld [vmem:[#allocation2_spill] sm:$0xff] }
 0x2c5   : > { %v1389_v19 = vpop.eup %1388  ;;  %v822_v56 = vsub.f32 %v2080_v59, %v744_v17 }
 0x2c6   : > { %v1391_v60 = vpop.eup %1390  ;;  %v946_v14 = vmul.f32 1.442695, %v836_v36  ;;  %v948_v15 = vmul.f32 1.442695, %v837_v6 }
 0x2c7   : > { %v1393_v41 = vpop.eup %1392  ;;  %v1008_v42 = vpack.c.bf16 %v1387_v58, %v1391_v60  ;;  %v918_v60 = vmul.f32 1.442695, %v822_v56 }
 0x2c8   : > { %v1009_v35 = vpack.c.bf16 %v1389_v19, %v1393_v41  ;;  %1394 = vpow2.f32 %v946_v14 }
 0x2c9   : > { %1061 = vmatpush.bf16.xpose.msra.mxu0 %v1010_v24  ;;  %1396 = vpow2.f32 %v948_v15 }
 0x2ca   : > { %1084 = vmatpush.bf16.xpose.msra.mxu1 %v1011_v28  ;;  %1398 = vpow2.f32 %v942_v52 }
 0x2cb   : > { %v756_v51 = vpop.xlane.xlu2 %755  ;;  %1400 = vpow2.f32 %v944_v26 }
 0x2cc   : > { %v830_v55 = vsub.f32 %v1686_v50, %v756_v51  ;;  %v831_v44 = vsub.f32 %v1688_v53, %v756_v51  ;;  %v823_v51 = vsub.f32 %v2081_v29, %v744_v17  ;;  %v1432_v17 = vld [vmem:[%s1475_s14 + $0x20] sm:$0xff] }
 0x2ce   : > { %v934_v63 = vmul.f32 1.442695, %v830_v55  ;;  %v936_v31 = vmul.f32 1.442695, %v831_v44 }
 0x2d0   : > { %1027 = vmatmul.bf16.gmra.mxu0 %v1953_v47 }
 0x2d1   : > { %1050 = vmatmul.bf16.gmra.mxu1 %v1955_v7  ;;  %1062 = vmatpush.bf16.xpose.msra.mxu0 %v1008_v42 }
 0x2d2   : > { %1085 = vmatpush.bf16.xpose.msra.mxu1 %v1009_v35 }
 0x2d3   : > { %v759_v13 = vpop.xlane.xlu2 %758 }
 0x2d4   : > { %v832_v16 = vsub.f32 %v1692_v61, %v759_v13  ;;  %v833_v27 = vsub.f32 %v1694_v0, %v759_v13  ;;  %v293_v61 = vpop.f32.mrf.mxu1  ;;  %v1395_v0 = vpop.eup %1394 }
 0x2d5   : > { %v1397_v50 = vpop.eup %1396  ;;  %v1977_v53 = vpack.c.bf16 %v293_v61, %v293_v61 }
 0x2d6   : > { %v938_v21 = vmul.f32 1.442695, %v832_v16  ;;  %v940_v54 = vmul.f32 1.442695, %v833_v27  ;;  %v1399_v57 = vpop.eup %1398 }
 0x2d7   : > { %v1004_v3 = vpack.c.bf16 %v1395_v0, %v1399_v57 }
 0x2d8   : > { %1402 = vpow2.f32 %v938_v21 }
 0x2d9   : > { %1063 = vmatpush.bf16.xpose.msra.mxu0 %v1006_v11  ;;  %v1401_v11 = vpop.eup %1400  ;;  %1404 = vpow2.f32 %v940_v54 }
 0x2da   : > { %1086 = vmatpush.bf16.xpose.msra.mxu1 %v1007_v25  ;;  %1406 = vpow2.f32 %v934_v63  ;;  %v1005_v25 = vpack.c.bf16 %v1397_v50, %v1401_v11 }
 0x2db   : > { %v750_v49 = vpop.xlane.xlu2 %749  ;;  %1408 = vpow2.f32 %v936_v31 }
 0x2dc   : > { %v826_v10 = vsub.f32 %v2077_v8, %v750_v49  ;;  %v827_v40 = vsub.f32 %v2078_v23, %v750_v49 }
 0x2de   : > { %v926_v34 = vmul.f32 1.442695, %v826_v10  ;;  %v928_v9 = vmul.f32 1.442695, %v827_v40  ;;  %v1403_v46 = vpop.eup %1402  ;;  %v1430_v40 = vld [vmem:[%s1475_s14] sm:$0xff] }
 0x2df   : > { %v1405_v62 = vpop.eup %1404 }
 0x2e0   : > { %1032 = vmatmul.bf16.gmra.mxu0 %v1975_v30  ;;  %v1407_v1 = vpop.eup %1406  ;;  %1410 = vpow2.f32 %v926_v34 }
 0x2e1   : > { %1055 = vmatmul.bf16.gmra.mxu1 %v1977_v53  ;;  %1064 = vmatpush.bf16.xpose.msra.mxu0 %v1004_v3  ;;  %v1409_v20 = vpop.eup %1408  ;;  %1412 = vpow2.f32 %v928_v9  ;;  %v1002_v58 = vpack.c.bf16 %v1403_v46, %v1407_v1 }
 0x2e2   : > { %1087 = vmatpush.bf16.xpose.msra.mxu1 %v1005_v25  ;;  %v1003_v19 = vpack.c.bf16 %v1405_v62, %v1409_v20  ;;  %v1431_v25 = vld [vmem:[%s1475_s14 + $0x10] sm:$0xff] }
 0x2e3   : > { %v753_v2 = vpop.xlane.xlu2 %752 }
 0x2e4   : > { %v828_v39 = vsub.f32 %v1680_v43, %v753_v2  ;;  %v829_v32 = vsub.f32 %v2079_v33, %v753_v2  ;;  %v920_v43 = vmul.f32 1.442695, %v823_v51  ;;  %v1433_v2 = vld [vmem:[%s1475_s14 + $0x30] sm:$0xff] }
 0x2e6   : > { %v930_v24 = vmul.f32 1.442695, %v828_v39  ;;  %v932_v28 = vmul.f32 1.442695, %v829_v32  ;;  %v1411_v41 = vpop.eup %1410 }
 0x2e7   : > { %v1413_v22 = vpop.eup %1412 }
 0x2e8   : > { %1414 = vpow2.f32 %v930_v24 }
 0x2e9   : > { %1416 = vpow2.f32 %v932_v28  ;;  %1065 = vmatpush.bf16.xpose.msra.mxu0 %v1002_v58 }
 0x2ea   : > { %1088 = vmatpush.bf16.xpose.msra.mxu1 %v1003_v19  ;;  %1418 = vpow2.f32 %v918_v60 }
 0x2eb   : > { %v747_v36 = vpop.xlane.xlu2 %746  ;;  %1420 = vpow2.f32 %v920_v43 }
 0x2ec   : > { %v824_v6 = vsub.f32 %v1668_v37, %v747_v36  ;;  %v825_v42 = vsub.f32 %v1670_v38, %v747_v36 }
 0x2ee   : > { %v1415_v45 = vpop.eup %1414  ;;  %v922_v35 = vmul.f32 1.442695, %v824_v6  ;;  %v924_v4 = vmul.f32 1.442695, %v825_v42 }
 0x2ef   : > { %v1417_v5 = vpop.eup %1416  ;;  %v1000_v14 = vpack.c.bf16 %v1415_v45, %v1411_v41 }
 0x2f0   : > { %1422 = vpow2.f32 %v922_v35  ;;  %v1001_v15 = vpack.c.bf16 %v1417_v5, %v1413_v22  ;;  %v1419_v13 = vpop.eup %1418 }
 0x2f1   : > { %1424 = vpow2.f32 %v924_v4  ;;  %1066 = vmatpush.bf16.xpose.msra.mxu0 %v1000_v14  ;;  %v1421_v52 = vpop.eup %1420  ;;  %v1434_v4 = vld [vmem:[%s1475_s14 + $0x8] sm:$0xff]  ;;  %v1435_v14 = vld [vmem:[%s1475_s14 + $0x18] sm:$0xff] }
 0x2f2   : > { %1089 = vmatpush.bf16.xpose.msra.mxu1 %v1001_v15 }
 0x2f6   : > { %v1423_v26 = vpop.eup %1422 }
 0x2f7   : > { %v1425_v16 = vpop.eup %1424  ;;  %v998_v37 = vpack.c.bf16 %v1423_v26, %v1419_v13  ;;  %v1436_v13 = vld [vmem:[%s1475_s14 + $0x28] sm:$0xff]  ;;  %v1437_v26 = vld [vmem:[%s1475_s14 + $0x38] sm:$0xff] }
 0x2f8   : > { %v999_v27 = vpack.c.bf16 %v1425_v16, %v1421_v52 }
 0x2f9   : > { %1067 = vmatpush.bf16.xpose.msra.mxu0 %v998_v37 }
 0x2fa   : > { %1090 = vmatpush.bf16.xpose.msra.mxu1 %v999_v27 }
 0x300   : > { %1068 = vmatmul.bf16.vlgmr.msra.gmra.mxu0 %v1939_v48 }
 0x301   : > { %1091 = vmatmul.bf16.vlgmr.msra.gmra.mxu1 %v1941_v18 }
 0x310   : > { %1073 = vmatmul.bf16.gmra.mxu0 %v1953_v47 }
 0x311   : > { %1096 = vmatmul.bf16.gmra.mxu1 %v1955_v7 }
 0x320   : > { %1078 = vmatmul.bf16.gmra.mxu0 %v1975_v30 }
 0x321   : > { %1101 = vmatmul.bf16.gmra.mxu1 %v1977_v53 }
 0x33d   : > { %v1023_v38 = vpop.f32.mrf.mxu0 }
 0x33e   : > { %v1046_v55 = vpop.f32.mrf.mxu1 }
 0x33f   : > { %v1047_v30 = vadd.f32 %v1046_v55, %v1023_v38 }
 0x345   : > { %v1025_v44 = vpop.f32.mrf.mxu0 }
 0x346   : > { %v1048_v12 = vpop.f32.mrf.mxu1 }
 0x347   : > { %v1049_v50 = vadd.f32 %v1048_v12, %v1025_v44 }
 0x34d   : > { %v1028_v21 = vpop.f32.mrf.mxu0 }
 0x34e   : > { %v1051_v61 = vpop.f32.mrf.mxu1 }
 0x34f   : > { %v1052_v31 = vadd.f32 %v1051_v61, %v1028_v21 }
 0x355   : > { %v1030_v54 = vpop.f32.mrf.mxu0 }
 0x356   : > { %v1053_v49 = vpop.f32.mrf.mxu1 }
 0x357   : > { %v1054_v53 = vadd.f32 %v1053_v49, %v1030_v54 }
 0x35d   : > { %v1033_v48 = vpop.f32.mrf.mxu0 }
 0x35e   : > { %v1056_v0 = vpop.f32.mrf.mxu1 }
 0x35f   : > { %v1057_v18 = vadd.f32 %v1056_v0, %v1033_v48 }
 0x361   : > { %1426 = vrcp.f32 %v1057_v18 }
 0x365   : > { %v1035_v47 = vpop.f32.mrf.mxu0 }
 0x366   : > { %v1058_v7 = vpop.f32.mrf.mxu1 }
 0x367   : > { %v1427_v63 = vpop.eup %1426 }
 0x368   : > { %v1108_v57 = vperm.slane %v1427_v63, 0 }
 0x36a   : > { %v1110_v8 = vmul.f32 %v1108_v57, %v1047_v30  ;;  %v1112_v10 = vmul.f32 %v1108_v57, %v1049_v50  ;;  %v1114_v11 = vmul.f32 %v1108_v57, %v1052_v31  ;;  %v1116_v23 = vmul.f32 %v1108_v57, %v1054_v53 }
 0x36c   : > { %v1118_v3 = vadd.f32 %v1430_v40, %v1110_v8  ;;  %v1120_v34 = vadd.f32 %v1431_v25, %v1112_v10  ;;  %v1122_v9 = vadd.f32 %v1432_v17, %v1114_v11  ;;  %v1124_v46 = vadd.f32 %v1433_v2, %v1116_v23 }
 0x36e   : > { %1126 = vst [vmem:[%s1999_s12] sm:$0xff] %v1118_v3 }
 0x36f   : > { %1128 = vst [vmem:[%s1999_s12 + $0x10] sm:$0xff] %v1120_v34 }
 0x370   : > { %1130 = vst [vmem:[%s1999_s12 + $0x20] sm:$0xff] %v1122_v9 }
 0x371   : > { %1132 = vst [vmem:[%s1999_s12 + $0x30] sm:$0xff] %v1124_v46 }
 0x37d   : > { %v1069_v39 = vpop.f32.mrf.mxu0 }
 0x37e   : > { %v1092_v33 = vpop.f32.mrf.mxu1 }
 0x37f   : > { %v1093_v60 = vadd.f32 %v1092_v33, %v1069_v39 }
 0x385   : > { %v1071_v32 = vpop.f32.mrf.mxu0 }
 0x386   : > { %v1094_v62 = vpop.f32.mrf.mxu1 }
 0x387   : > { %v1095_v43 = vadd.f32 %v1094_v62, %v1071_v32 }
 0x38d   : > { %v1074_v1 = vpop.f32.mrf.mxu0 }
 0x38e   : > { %v1097_v59 = vpop.f32.mrf.mxu1 }
 0x38f   : > { %v1098_v36 = vadd.f32 %v1097_v59, %v1074_v1 }
 0x395   : > { %v1076_v56 = vpop.f32.mrf.mxu0 }
 0x396   : > { %v1099_v24 = vpop.f32.mrf.mxu1 }
 0x397   : > { %v1100_v41 = vadd.f32 %v1099_v24, %v1076_v56 }
 0x39d   : > { %v1079_v28 = vpop.f32.mrf.mxu0 }
 0x39e   : > { %v1102_v20 = vpop.f32.mrf.mxu1 }
 0x39f   : > { %v1103_v29 = vadd.f32 %v1102_v20, %v1079_v28 }
 0x3a1   : > { %1428 = vrcp.f32 %v1103_v29 }
 0x3a5   : > { %v1081_v51 = vpop.f32.mrf.mxu0 }
 0x3a6   : > { %v1104_v58 = vpop.f32.mrf.mxu1 }
 0x3a7   : > { %v1429_v19 = vpop.eup %1428 }
 0x3a8   : > { %v1109_v6 = vperm.slane %v1429_v19, 0 }
 0x3aa   : > { %v1111_v42 = vmul.f32 %v1109_v6, %v1093_v60  ;;  %v1113_v22 = vmul.f32 %v1109_v6, %v1095_v43  ;;  %v1115_v45 = vmul.f32 %v1109_v6, %v1098_v36  ;;  %v1117_v35 = vmul.f32 %v1109_v6, %v1100_v41 }
 0x3ac   : > { %v1119_v5 = vadd.f32 %v1434_v4, %v1111_v42  ;;  %v1121_v15 = vadd.f32 %v1435_v14, %v1113_v22  ;;  %v1123_v52 = vadd.f32 %v1436_v13, %v1115_v45  ;;  %v1125_v16 = vadd.f32 %v1437_v26, %v1117_v35 }
 0x3ae   : > { %1127 = vst [vmem:[%s1999_s12 + $0x8] sm:$0xff] %v1119_v5 }
 0x3af   : > { %1129 = vst [vmem:[%s1999_s12 + $0x18] sm:$0xff] %v1121_v15 }
 0x3b0   : > { %1131 = vst [vmem:[%s1999_s12 + $0x28] sm:$0xff] %v1123_v52 }
 0x3b1   : > { %1133 = vst [vmem:[%s1999_s12 + $0x38] sm:$0xff] %v1125_v16 }
 0x3b2 PF: > { %s12_s9 = sadd.s32 1, %s1444_s9  }
 0x3b3   : > { %p9_p4 = scmp.ge.s32.totalorder %s12_s9, 4  }
 0x3b5   :  { %11 = sbr.rel (!%p9_p4) target bundleno = 1 (0x1), region = 58 }

</bundles_post_ra>
